<compile_context>
chip_gen: v7x
topology: tpu7x:2x2x1
jax: 0.10.0
libtpu: 0.0.40
codegen_flags: <defaults>
</compile_context>

<pallas_src>
import jax
import jax.numpy as jnp
from jax.experimental import pallas as pl
from jax.experimental.pallas import tpu as pltpu

IN_DIMS = (10, 8, 6)
OUT_DIMS = (8, 6, 4)
N_LAYERS = 3
IN_PAD = 16     # padded input feature width (>= 10, one bf16 sublane granule)
FPAD = 128      # padded hidden feature width (one lane tile)
OUT_PAD = 8     # padded output feature width stored to HBM (>= 4)


def mlp_kernel(x_ref, w1_ref, w23_ref, b_ref, o_ref):
    # x_ref:   (tile_b, 16)   bf16   zero-padded activations
    # w1_ref:  (16, 128)      bf16   layer-1 weight (rows 0..9 valid)
    # w23_ref: (2, 128, 128)  bf16   layer-2/3 weights (zero padded)
    # b_ref:   (3, 128)       f32    per-layer biases (zero padded)
    # o_ref:   (tile_b, 8)    bf16   padded outputs (lanes 0..3 valid)

    # Layer 1: (tile_b, 16) @ (16, 128) -- short-K MXU pass, f32 accumulate.
    h = jnp.dot(x_ref[...], w1_ref[...], preferred_element_type=jnp.float32)
    h = jnp.maximum(h + b_ref[0:1, :], 0.0)

    # Layers 2 and 3: (tile_b, 128) @ (128, 128); padded rows/cols are exact zeros.
    for l in range(1, N_LAYERS):
        h = jnp.dot(h.astype(jnp.bfloat16), w23_ref[l - 1],
                    preferred_element_type=jnp.float32)
        h = jnp.maximum(h + b_ref[l:l + 1, :], 0.0)

    # Valid outputs live in lanes 0..3; store only the narrow OUT_PAD slab.
    o_ref[...] = h[:, :OUT_PAD].astype(o_ref.dtype)


def pack_params(params):
    """Pack (W_l, b_l) into three small padded operands (weights bf16, biases f32)."""
    w1 = jnp.zeros((IN_PAD, FPAD), jnp.float32)
    w1 = w1.at[:IN_DIMS[0], :OUT_DIMS[0]].set(params["w1"])

    w23 = jnp.zeros((N_LAYERS - 1, FPAD, FPAD), jnp.float32)
    for l in (1, 2):
        w23 = w23.at[l - 1, :IN_DIMS[l], :OUT_DIMS[l]].set(params[f"w{l + 1}"])

    b = jnp.zeros((N_LAYERS, FPAD), jnp.float32)
    for l in range(N_LAYERS):
        b = b.at[l, :OUT_DIMS[l]].set(params[f"b{l + 1}"].reshape(-1))

    return w1.astype(jnp.bfloat16), w23.astype(jnp.bfloat16), b


def _cdiv(a, m):
    return -(-a // m)


def _round_up(n, m):
    return _cdiv(n, m) * m


def _choose_tiles(batch, max_tile_b):
    """Pick (tile_b, n_steps): tile sized to keep trailing padding < one tile;
    >=2 grid steps for mid/large batches so 'parallel' shards across v7x cores."""
    n_steps = max(_cdiv(batch, max_tile_b), 2 if batch >= 256 else 1)
    tile_b = _round_up(_cdiv(batch, n_steps), 16)   # 16-row (bf16 sublane) alignment
    n_steps = _cdiv(batch, tile_b)
    return tile_b, n_steps


def module_list_demo(x, params, max_tile_b=2048):
    """x: (B, 10) float32; params: dict of w1,b1,w2,b2,w3,b3 (W as (in,out), b as (1,out))."""
    B = x.shape[0]
    tile_b, n_steps = _choose_tiles(B, max_tile_b)
    b_pad = tile_b * n_steps

    # Narrow, lane-light input slab: (b_pad, 16) bf16 -> ~32 B/row of host-side pad.
    x_pad = jnp.pad(x.astype(jnp.bfloat16),
                    ((0, b_pad - B), (0, IN_PAD - IN_DIMS[0])))
    w1p, w23p, bp = pack_params(params)

    out_pad = pl.pallas_call(
        mlp_kernel,
        out_shape=jax.ShapeDtypeStruct((b_pad, OUT_PAD), jnp.bfloat16),
        grid_spec=pltpu.PrefetchScalarGridSpec(
            num_scalar_prefetch=0,
            grid=(n_steps,),
            in_specs=[
                pl.BlockSpec((tile_b, IN_PAD), lambda i: (i, 0)),        # x tile (streamed)
                pl.BlockSpec((IN_PAD, FPAD), lambda i: (0, 0)),          # W1 (resident)
                pl.BlockSpec((N_LAYERS - 1, FPAD, FPAD),
                             lambda i: (0, 0, 0)),                        # W2/W3 (resident)
                pl.BlockSpec((N_LAYERS, FPAD), lambda i: (0, 0)),        # biases (resident)
            ],
            out_specs=pl.BlockSpec((tile_b, OUT_PAD), lambda i: (i, 0)),  # narrow bf16 store
        ),
        compiler_params=pltpu.CompilerParams(
            dimension_semantics=("parallel",),   # shard batch tiles across TCs (v7x)
        ),
    )(x_pad, w1p, w23p, bp)

    return out_pad[:B, :OUT_DIMS[-1]].astype(jnp.float32)


def init_params(key):
    """Deterministic synthetic params matching nn.Linear(10,8), (8,6), (6,4)."""
    params = {}
    for i, (fan_in, fan_out) in enumerate(zip(IN_DIMS, OUT_DIMS), start=1):
        key, kw, kb = jax.random.split(key, 3)
        bound = 1.0 / jnp.sqrt(fan_in)
        # Stored transposed relative to PyTorch: (in_features, out_features).
        params[f"w{i}"] = jax.random.uniform(
            kw, (fan_in, fan_out), jnp.float32, -bound, bound)
        params[f"b{i}"] = jax.random.uniform(
            kb, (1, fan_out), jnp.float32, -bound, bound)
    return params


def reference(x, params):
    h = x
    for i in (1, 2, 3):
        h = jnp.maximum(h @ params[f"w{i}"] + params[f"b{i}"], 0.0)
    return h


if __name__ == "__main__":
    key = jax.random.PRNGKey(0)
    key, kx = jax.random.split(key)
    x = jax.random.normal(kx, (2, 10), jnp.float32)  # matches torch.randn(2, 10)
    params = init_params(key)

    out = module_list_demo(x, params)
    out = jax.block_until_ready(out)

    ref = reference(x, params)
    assert out.shape == (2, 4), out.shape
    # bf16 weight/activation path vs f32 reference -> loosened tolerance.
    assert jnp.allclose(out, ref, atol=3e-2, rtol=3e-2), "mismatch vs reference"
    print("KERNEL_OK")
</pallas_src>

<mosaic_0001>
module attributes {stable_mosaic.version = 11 : i64} {
  func.func @mlp_kernel(%arg0: i32, %arg1: memref<16x16xbf16, #tpu.memory_space<vmem>>, %arg2: memref<16x128xbf16, #tpu.memory_space<vmem>>, %arg3: memref<2x128x128xbf16, #tpu.memory_space<vmem>>, %arg4: memref<3x128xf32, #tpu.memory_space<vmem>>, %arg5: memref<16x8xbf16, #tpu.memory_space<vmem>>) attributes {dimension_semantics = [#tpu.dimension_semantics<parallel>], iteration_bounds = array<i64: 1>, scalar_prefetch = 0 : i64, scratch_operands = 0 : i64, tpu.core_type = #tpu.core_type<tc>, window_params = [{transform_indices = @transform_0, window_bounds = array<i64: 16, 16>}, {pipeline_mode = #tpu.pipeline_mode<synchronous>, transform_indices = @transform_1, window_bounds = array<i64: 16, 128>}, {pipeline_mode = #tpu.pipeline_mode<synchronous>, transform_indices = @transform_2, window_bounds = array<i64: 2, 128, 128>}, {pipeline_mode = #tpu.pipeline_mode<synchronous>, transform_indices = @transform_3, window_bounds = array<i64: 3, 128>}, {transform_indices = @transform_4, window_bounds = array<i64: 16, 8>}]} {
    %c0 = arith.constant 0 : index
    %c0_0 = arith.constant 0 : index
    %0 = vector.load %arg1[%c0, %c0_0] : memref<16x16xbf16, #tpu.memory_space<vmem>>, vector<16x16xbf16>
    %c0_1 = arith.constant 0 : index
    %c0_2 = arith.constant 0 : index
    %1 = vector.load %arg2[%c0_1, %c0_2] : memref<16x128xbf16, #tpu.memory_space<vmem>>, vector<16x128xbf16>
    %cst = arith.constant dense<0.000000e+00> : vector<16x128xf32>
    %2 = tpu.matmul %0, %1, %cst {dimension_numbers = #tpu.dot_dimension_numbers<[1], [0], [0], [1], [0, 0, 1, 1], [], []>} : vector<16x16xbf16>, vector<16x128xbf16>, vector<16x128xf32> -> vector<16x128xf32>
    %c0_3 = arith.constant 0 : index
    %c0_4 = arith.constant 0 : index
    %3 = vector.load %arg4[%c0_3, %c0_4] : memref<3x128xf32, #tpu.memory_space<vmem>>, vector<1x128xf32>
    %4 = vector.broadcast %3 : vector<1x128xf32> to vector<16x128xf32>
    %5 = arith.addf %2, %4 : vector<16x128xf32>
    %cst_5 = arith.constant 0.000000e+00 : f32
    %6 = vector.broadcast %cst_5 : f32 to vector<16x128xf32>
    %7 = arith.maximumf %5, %6 : vector<16x128xf32>
    %8 = arith.truncf %7 : vector<16x128xf32> to vector<16x128xbf16>
    %c0_6 = arith.constant 0 : index
    %c0_7 = arith.constant 0 : index
    %c0_8 = arith.constant 0 : index
    %9 = vector.load %arg3[%c0_6, %c0_7, %c0_8] : memref<2x128x128xbf16, #tpu.memory_space<vmem>>, vector<1x128x128xbf16>
    %10 = vector.shape_cast %9 : vector<1x128x128xbf16> to vector<128x128xbf16>
    %cst_9 = arith.constant dense<0.000000e+00> : vector<16x128xf32>
    %11 = tpu.matmul %8, %10, %cst_9 {dimension_numbers = #tpu.dot_dimension_numbers<[1], [0], [0], [1], [0, 0, 1, 1], [], []>} : vector<16x128xbf16>, vector<128x128xbf16>, vector<16x128xf32> -> vector<16x128xf32>
    %c1 = arith.constant 1 : index
    %c0_10 = arith.constant 0 : index
    %12 = vector.load %arg4[%c1, %c0_10] : memref<3x128xf32, #tpu.memory_space<vmem>>, vector<1x128xf32>
    %13 = vector.broadcast %12 : vector<1x128xf32> to vector<16x128xf32>
    %14 = arith.addf %11, %13 : vector<16x128xf32>
    %cst_11 = arith.constant 0.000000e+00 : f32
    %15 = vector.broadcast %cst_11 : f32 to vector<16x128xf32>
    %16 = arith.maximumf %14, %15 : vector<16x128xf32>
    %17 = arith.truncf %16 : vector<16x128xf32> to vector<16x128xbf16>
    %c1_12 = arith.constant 1 : index
    %c0_13 = arith.constant 0 : index
    %c0_14 = arith.constant 0 : index
    %18 = vector.load %arg3[%c1_12, %c0_13, %c0_14] : memref<2x128x128xbf16, #tpu.memory_space<vmem>>, vector<1x128x128xbf16>
    %19 = vector.shape_cast %18 : vector<1x128x128xbf16> to vector<128x128xbf16>
    %cst_15 = arith.constant dense<0.000000e+00> : vector<16x128xf32>
    %20 = tpu.matmul %17, %19, %cst_15 {dimension_numbers = #tpu.dot_dimension_numbers<[1], [0], [0], [1], [0, 0, 1, 1], [], []>} : vector<16x128xbf16>, vector<128x128xbf16>, vector<16x128xf32> -> vector<16x128xf32>
    %c2 = arith.constant 2 : index
    %c0_16 = arith.constant 0 : index
    %21 = vector.load %arg4[%c2, %c0_16] : memref<3x128xf32, #tpu.memory_space<vmem>>, vector<1x128xf32>
    %22 = vector.broadcast %21 : vector<1x128xf32> to vector<16x128xf32>
    %23 = arith.addf %20, %22 : vector<16x128xf32>
    %cst_17 = arith.constant 0.000000e+00 : f32
    %24 = vector.broadcast %cst_17 : f32 to vector<16x128xf32>
    %25 = arith.maximumf %23, %24 : vector<16x128xf32>
    %26 = vector.extract_strided_slice %25 {offsets = [0, 0], sizes = [16, 8], strides = [1, 1]} : vector<16x128xf32> to vector<16x8xf32>
    %27 = arith.truncf %26 : vector<16x8xf32> to vector<16x8xbf16>
    %c0_18 = arith.constant 0 : index
    %c0_19 = arith.constant 0 : index
    %28 = vector.load %arg5[%c0_18, %c0_19] : memref<16x8xbf16, #tpu.memory_space<vmem>>, vector<16x8xbf16>
    tpu.vector_store %arg5[%c0_18, %c0_19], %27 {strides = array<i32>} : memref<16x8xbf16, #tpu.memory_space<vmem>>, vector<16x8xbf16>,
    return
  }
  func.func @transform_0(%arg0: i32) -> (i32, i32) {
    %c0_i32 = arith.constant 0 : i32
    %c0_i32_0 = arith.constant 0 : i32
    return %arg0, %c0_i32 : i32, i32
  }
  func.func @transform_1(%arg0: i32) -> (i32, i32) {
    %c0_i32 = arith.constant 0 : i32
    %c0_i32_0 = arith.constant 0 : i32
    %c0_i32_1 = arith.constant 0 : i32
    return %c0_i32, %c0_i32_0 : i32, i32
  }
  func.func @transform_2(%arg0: i32) -> (i32, i32, i32) {
    %c0_i32 = arith.constant 0 : i32
    %c0_i32_0 = arith.constant 0 : i32
    %c0_i32_1 = arith.constant 0 : i32
    %c0_i32_2 = arith.constant 0 : i32
    return %c0_i32, %c0_i32_0, %c0_i32_1 : i32, i32, i32
  }
  func.func @transform_3(%arg0: i32) -> (i32, i32) {
    %c0_i32 = arith.constant 0 : i32
    %c0_i32_0 = arith.constant 0 : i32
    %c0_i32_1 = arith.constant 0 : i32
    return %c0_i32, %c0_i32_0 : i32, i32
  }
  func.func @transform_4(%arg0: i32) -> (i32, i32) {
    %c0_i32 = arith.constant 0 : i32
    %c0_i32_0 = arith.constant 0 : i32
    return %arg0, %c0_i32 : i32, i32
  }
}

</mosaic_0001>

<bundles_post_ra>
// kernel: tpu_custom_call.1
= control target key start
LH: loop header
LB: loop body
LE: loop exit
PB: predicated region body
PF: predicated region fallthrough
CT: control target
= control target key end

     0   :  { %9 = vsyncpa [#allocation3], 0  ;;  %s676_s0 = inlined_call_operand.hbm [shape: bf16[16,16], index: 0, kind: input, shape index: {}]   ;;  %s677_s1 = inlined_call_operand.hbm [shape: bf16[16,128], index: 1, kind: input, shape index: {}]   ;;  %s678_s2 = inlined_call_operand.hbm [shape: bf16[2,128,128], index: 2, kind: input, shape index: {}]   ;;  %s679_s3 = inlined_call_operand.vmem [shape: f32[3,128], index: 3, kind: input, shape index: {}]   ;;  %s680_s4 = inlined_call_operand.vmem [shape: bf16[16,8], index: 4, kind: output, shape index: {}]  }
   0x1   :  { %10 = vsyncpa [#allocation5], 0  ;;  %s557_s15 = smov [#allocation4]   ;;  %s558_s17 = smov [#allocation2]  }
   0x2   :  { %s28_s16 = sshll.u32 %s557_s15, 4  ;;  %s16_s18 = sshll.u32 %s558_s17, 4  ;;  %s29_s16 = int_to_ptr.vmem [resolvable:$true] %s28_s16  ;;  %s589_s18 = int_to_ptr.vmem [resolvable:$true] %s16_s18 }
   0x3   :  { %s487_s21 = scalar_lea.hbm %s677_s1, 128 }
   0x4   :  { %p488_p0 = scmp.ne.s32.totalorder %s677_s1, %s487_s21  ;;  %p491_p1 = scmp.lt.u32.totalorder %s487_s21, %s677_s1 }
   0x6   :  { %p493_p2 = pnand %p491_p1, %p488_p0 }
   0x8   :  { %496 = shalt.err (!%p493_p2)
}
   0x9   :  { %s497_s26 = scalar_lea.vmem %s29_s16, 128  ;;  %p502_p4 = scmp.lt.s32.totalorder %s29_s16, %s29_s16 }
   0xa   :  { %p498_p3 = scmp.ne.s32.totalorder %s29_s16, %s497_s26  ;;  %p503_p5 = scmp.lt.s32.totalorder %s497_s26, %s497_s26 }
   0xc   :  { %p504_p6 = por %p503_p5, %p502_p4 }
   0xe   :  { %p505_p7 = pnand %p504_p6, %p498_p3 }
  0x10   :  { %508 = shalt.err (!%p505_p7)
}
  0x11   :  { %s559_s27 = smov 64   ;;  %s560_s28 = smov 4  }
  0x12   :  { %34 = dma.hbm_to_vmem [thread:$0]  %s677_s1, 128, %s29_s16, [#allocation5], %s559_s27, %s559_s27, %s560_s28  }
  0x13   :  { %s509_s7 = scalar_lea.hbm %s676_s0, 128 }
  0x14   :  { %p510_p8 = scmp.ne.s32.totalorder %s676_s0, %s509_s7  ;;  %p513_p9 = scmp.lt.u32.totalorder %s509_s7, %s676_s0 }
  0x16   :  { %p515_p10 = pnand %p513_p9, %p510_p8 }
  0x18   :  { %518 = shalt.err (!%p515_p10)
}
  0x19   :  { %s519_s12 = scalar_lea.vmem %s589_s18, 128  ;;  %p524_p12 = scmp.lt.s32.totalorder %s589_s18, %s589_s18 }
  0x1a   :  { %p520_p11 = scmp.ne.s32.totalorder %s589_s18, %s519_s12  ;;  %p525_p13 = scmp.lt.s32.totalorder %s519_s12, %s519_s12 }
  0x1c   :  { %p526_p0 = por %p525_p13, %p524_p12 }
  0x1e   :  { %p527_p1 = pnand %p526_p0, %p520_p11 }
  0x20   :  { %530 = shalt.err (!%p527_p1)
}
  0x21   :  { %22 = dma.hbm_to_vmem [thread:$0]  %s676_s0, 128, %s589_s18, [#allocation3], %s559_s27, %s559_s27, %s560_s28  }
  0x22   :  { %s561_s14 = smov [#allocation6]   ;;  %s531_s19 = scalar_lea.hbm %s678_s2, 2048 }
  0x23   :  { %s40_s15 = sshll.u32 %s561_s14, 4  ;;  %p532_p2 = scmp.ne.s32.totalorder %s678_s2, %s531_s19  ;;  %s41_s15 = int_to_ptr.vmem [resolvable:$true] %s40_s15 }
  0x24   :  { %p535_p3 = scmp.lt.u32.totalorder %s531_s19, %s678_s2 }
  0x26   :  { %p537_p4 = pnand %p535_p3, %p532_p2 }
  0x28   :  { %540 = shalt.err (!%p537_p4)
}
  0x29   :  { %s541_s24 = scalar_lea.vmem %s41_s15, 2048  ;;  %p546_p6 = scmp.lt.s32.totalorder %s41_s15, %s41_s15 }
  0x2a   :  { %p542_p5 = scmp.ne.s32.totalorder %s41_s15, %s541_s24  ;;  %p547_p7 = scmp.lt.s32.totalorder %s541_s24, %s541_s24 }
  0x2c   :  { %p548_p8 = por %p547_p7, %p546_p6 }
  0x2e   :  { %p549_p9 = pnand %p548_p8, %p542_p5 }
  0x30   :  { %552 = shalt.err (!%p549_p9)
}
  0x31   :  { %46 = dma.hbm_to_vmem [thread:$0]  %s678_s2, 2048, %s41_s15, [#allocation5], %s559_s27, %s559_s27, %s560_s28  }
  0x32   :  { %553 = dma.done.wait [#allocation3], 128  }
  0x33   :  { %554 = vsyncadd [#allocation3], 4294967168 }
  0x34   :  { %555 = dma.done.wait [#allocation5], 2176  }
  0x35   :  { %556 = vsyncadd [#allocation5], 4294965120  ;;  %v562_v0 = vmov 0.0   ;;  %vm563_vm0 = vmmov 0   ;;  %v469_v1 = vld [vmem:[#allocation4] sm:$0xff]   ;;  %v470_v2 = vld [vmem:[#allocation2] sm:$0xff]  }
  0x36   :  { %416 = vmatprep.subr.bf16.mxu0 %v562_v0  ;;  %418 = vmatprep.mubr.msk.bf16.mxu0 %vm563_vm0, %v562_v0  ;;  %vm79_vm1 = vcmask 130048   ;;  %v471_v3 = vld [vmem:[#allocation6] sm:$0xff]   ;;  %v472_v4 = vld [vmem:[#allocation6 + $0x8] sm:$0xff]   ;;  %v473_v5 = vld [vmem:[#allocation6 + $0x10] sm:$0xff]   ;;  %vm361_vm2 = vcmask 60416  }
  0x37   :  { %422 = vmatprep.subr.bf16.mxu1 %v562_v0  ;;  %438 = vmatprep.mubr.msk.bf16.mxu1 %vm563_vm0, %v562_v0  ;;  %v474_v6 = vld [vmem:[#allocation6 + $0x18] sm:$0xff]   ;;  %v475_v7 = vld [vmem:[#allocation6 + $0x20] sm:$0xff]   ;;  %v476_v8 = vld [vmem:[#allocation6 + $0x28] sm:$0xff]  }
  0x38   :  { %417 = vmatpush3.bf16.msra.mxu0 %v469_v1  ;;  %423 = vmatpush3.bf16.msra.mxu1 %v471_v3  ;;  %v477_v9 = vld [vmem:[#allocation6 + $0x30] sm:$0xff]   ;;  %v478_v10 = vld [vmem:[#allocation6 + $0x38] sm:$0xff]   ;;  %v479_v11 = vld [vmem:[#allocation6 + $0x40] sm:$0xff]  }
  0x39   :  { %442 = vmatprep.subr.bf16.mxu0 %v562_v0  ;;  %424 = vmatprep.subr.bf16.mxu1 %v562_v0  ;;  %v480_v12 = vld [vmem:[#allocation6 + $0x48] sm:$0xff]   ;;  %v481_v13 = vld [vmem:[#allocation6 + $0x50] sm:$0xff]   ;;  %v482_v14 = vld [vmem:[#allocation6 + $0x58] sm:$0xff]  }
  0x3a   :  { %v483_v15 = vld [vmem:[#allocation6 + $0x60] sm:$0xff]   ;;  %v484_v16 = vld [vmem:[#allocation6 + $0x68] sm:$0xff]   ;;  %v485_v27 = vld [vmem:[#allocation6 + $0x70] sm:$0xff]  }
  0x3b   :  { %419 = vmatmul.mubr.msk.bf16.vlgmr.msra.gmra.mrb[0].mxu0 %vm79_vm1, %v470_v2  ;;  %v370_v17 = vld [vmem:[%s679_s3] ss:$0 sm:$0xff]  ;;  %v486_v28 = vld [vmem:[#allocation6 + $0x78] sm:$0xff]   ;;  %v374_v29 = vld [vmem:[%s679_s3 + $0x1] ss:$0 sm:$0xff] }
  0x3c   :  { %458 = vmatprep.mubr.msk.bf16.mxu0 %vm563_vm0, %v562_v0  ;;  %425 = vmatpush3.bf16.msra.mxu1 %v472_v4  ;;  %v383_v39 = vld [vmem:[%s679_s3 + $0x2] ss:$0 sm:$0xff] }
  0x3d   :  { %426 = vmatprep.subr.bf16.mxu1 %v562_v0  ;;  %443 = vmatpush3.bf16.msra.mxu0 %v479_v11 }
  0x3e   :  { %444 = vmatprep.subr.bf16.mxu0 %v562_v0 }
  0x40   :  { %427 = vmatpush3.bf16.msra.mxu1 %v473_v5 }
  0x41   :  { %428 = vmatprep.subr.bf16.mxu1 %v562_v0  ;;  %445 = vmatpush3.bf16.msra.mxu0 %v480_v12 }
  0x42   :  { %446 = vmatprep.subr.bf16.mxu0 %v562_v0 }
  0x44   :  { %429 = vmatpush3.bf16.msra.mxu1 %v474_v6 }
  0x45   :  { %430 = vmatprep.subr.bf16.mxu1 %v562_v0  ;;  %447 = vmatpush3.bf16.msra.mxu0 %v481_v13 }
  0x46   :  { %448 = vmatprep.subr.bf16.mxu0 %v562_v0 }
  0x48   :  { %431 = vmatpush3.bf16.msra.mxu1 %v475_v7 }
  0x49   :  { %432 = vmatprep.subr.bf16.mxu1 %v562_v0  ;;  %449 = vmatpush3.bf16.msra.mxu0 %v482_v14 }
  0x4a   :  { %450 = vmatprep.subr.bf16.mxu0 %v562_v0 }
  0x4c   :  { %433 = vmatpush3.bf16.msra.mxu1 %v476_v8 }
  0x4d   :  { %434 = vmatprep.subr.bf16.mxu1 %v562_v0  ;;  %451 = vmatpush3.bf16.msra.mxu0 %v483_v15 }
  0x4e   :  { %452 = vmatprep.subr.bf16.mxu0 %v562_v0 }
  0x50   :  { %435 = vmatpush3.bf16.msra.mxu1 %v477_v9 }
  0x51   :  { %436 = vmatprep.subr.bf16.mxu1 %v562_v0  ;;  %453 = vmatpush3.bf16.msra.mxu0 %v484_v16 }
  0x52   :  { %454 = vmatprep.subr.bf16.mxu0 %v562_v0 }
  0x54   :  { %437 = vmatpush3.bf16.msra.mxu1 %v478_v10 }
  0x55   :  { %455 = vmatpush3.bf16.msra.mxu0 %v485_v27 }
  0x56   :  { %456 = vmatprep.subr.bf16.mxu0 %v562_v0 }
  0x59   :  { %457 = vmatpush3.bf16.msra.mxu0 %v486_v28 }
 0x10e   :  { %v117_v18 = vpop.f32.mrb[0].mxu0 }
 0x10f   :  { %v118_v19 = vadd.f32 %v370_v17, %v117_v18  ;;  %v420_v20 = vpop.f32.mrb[1].mxu0 }
 0x110   :  { %v120_v21 = vpop.f32.mrb[2].mxu0 }
 0x111   :  { %v121_v22 = vadd.f32 %v370_v17, %v120_v21  ;;  %v421_v23 = vpop.f32.mrb[3].mxu0  ;;  %v124_v24 = vmax.f32 %v118_v19, 0.0 }
 0x113   :  { %v125_v25 = vmax.f32 %v121_v22, 0.0 }
 0x115   :  { %v126_v26 = vpack.c.bf16 %v125_v25, %v124_v24 }
 0x117   :  { %439 = vmatmul.mubr.bf16.vlgmr.msra.gmra.mrb[0].mxu1 %v126_v26 }
 0x1ea   :  { %v230_v30 = vpop.f32.mrb[0].mxu1 }
 0x1eb   :  { %v231_v31 = vadd.f32 %v374_v29, %v230_v30  ;;  %v440_v32 = vpop.f32.mrb[1].mxu1 }
 0x1ec   :  { %v233_v33 = vpop.f32.mrb[2].mxu1 }
 0x1ed   :  { %v234_v34 = vadd.f32 %v374_v29, %v233_v33  ;;  %v441_v35 = vpop.f32.mrb[3].mxu1  ;;  %v237_v36 = vmax.f32 %v231_v31, 0.0 }
 0x1ef   :  { %v238_v37 = vmax.f32 %v234_v34, 0.0 }
 0x1f1   :  { %v239_v38 = vpack.c.bf16 %v238_v37, %v237_v36 }
 0x1f3   :  { %459 = vmatmul.mubr.bf16.vlgmr.msra.gmra.mrb[4].mxu0 %v239_v38 }
 0x2c6   :  { %v344_v40 = vpop.f32.mrb[4].mxu0 }
 0x2c7   :  { %v345_v41 = vadd.f32 %v383_v39, %v344_v40  ;;  %v460_v42 = vpop.f32.mrb[5].mxu0 }
 0x2c8   :  { %v347_v43 = vpop.f32.mrb[6].mxu0 }
 0x2c9   :  { %v351_v44 = vmax.f32 %v345_v41, 0.0  ;;  %v348_v45 = vadd.f32 %v383_v39, %v347_v43  ;;  %v461_v46 = vpop.f32.mrb[7].mxu0 }
 0x2cb   :  { %v394_v47 = vpack.c.bf16 %v351_v44, %v351_v44  ;;  %v352_v48 = vmax.f32 %v348_v45, 0.0 }
 0x2cd   :  { %362 = vst.msk [vmem:[%s680_s4] sm:$0xf] %vm361_vm2, %v394_v47  ;;  %v395_v49 = vpack.c.bf16 %v352_v48, %v352_v48 }
 0x2cf   :  { %363 = vst.msk [vmem:[%s680_s4 + $0x4] sm:$0xf] %vm361_vm2, %v395_v49 }
 0x2d0   :  { %368 = vsyncpa [#allocation3], 1 }
 0x2d1   :  { %369 = vsyncpa [#allocation5], 1 }

</bundles_post_ra>
